<compile_context>
chip_gen: v7x
topology: tpu7x:2x2x1
jax: 0.10.0
libtpu: 0.0.40
codegen_flags: <defaults>
</compile_context>

<pallas_src>
import functools
import math

import jax
import jax.numpy as jnp
import numpy as np
from jax.experimental import pallas as pl
from jax.experimental.pallas import tpu as pltpu


_TARGET_BLOCK_ELEMS = 512 * 1024          # 2 MiB per f32 plane block
_VMEM_LIMIT_BYTES = 40 * 1024 * 1024      # 16 MiB working set + headroom; < 64 MiB (v7x)
_F32_SMALLEST_NORMAL = float(np.finfo(np.float32).tiny)


def _silu(x):
    # SiLU / swish: x * sigmoid(x).  pl.reciprocal keeps the 1/(1+e^-x) on the
    # EUP slot instead of a VPU divide lowering.
    return x * pl.reciprocal(1.0 + jnp.exp(-x), approx=False)


def _complex_act_kernel(re_ref, im_ref, ore_ref, oim_ref, *, use_phase: bool):
    re = re_ref[...]
    im = im_ref[...]
    if use_phase:
        # out = silu(tanh(|z|)) * exp(i*angle(z)) == (silu(tanh(r)) / r) * (re, im)
        # Overflow-safe |z|: r = amax * sqrt((re/amax)^2 + (im/amax)^2).
        amax = jnp.maximum(jnp.abs(re), jnp.abs(im))
        amax_s = jnp.where(amax > _F32_SMALLEST_NORMAL, amax, 1.0)  # guards z ~ 0
        inv_amax = pl.reciprocal(amax_s, approx=False)
        a = re * inv_amax
        b = im * inv_amax
        q = a * a + b * b                      # in [1, 2] for normal inputs
        q_s = jnp.where(q > 0.0, q, 1.0)
        inv_rq = jax.lax.rsqrt(q_s)            # EUP rsqrt
        r = amax_s * (q_s * inv_rq)            # == |z|; tanh saturates if this infs
        mag = _silu(jnp.tanh(r))               # silu(tanh(|z|)); 0 when z == 0
        scale = (mag * inv_amax) * inv_rq      # mag / |z|, computed without overflow
        ore_ref[...] = re * scale
        oim_ref[...] = im * scale
    else:
        ore_ref[...] = _silu(re)
        oim_ref[...] = _silu(im)


def complex_act_planes(re: jax.Array, im: jax.Array, use_phase: bool = False,
                       core_parallel: bool = False):
    """ComplexAct on (real, imag) f32 planes; returns (out_re, out_im) planes.

    Preferred entry point: avoids the complex split/recombine HBM passes when
    the surrounding model already carries real/imag planes.
    """
    re = jnp.asarray(re, jnp.float32)
    im = jnp.asarray(im, jnp.float32)
    assert re.shape == im.shape, (re.shape, im.shape)
    shape = re.shape
    n = math.prod(shape) if shape else 1

    # Lane-dense 2D layout (rows, lane) with lane a multiple of 128 that divides
    # numel whenever possible (no padding copy in that case).
    lane = None
    for cand in (1024, 512, 256, 128):
        if n % cand == 0:
            lane = cand
            break

    re_f = re.reshape(-1)
    im_f = im.reshape(-1)
    if lane is None:
        # TODO(synk): only hit when numel isn't a multiple of 128; adds one
        # small pad copy (padded zeros map to zero outputs and are sliced off).
        lane = 128
        n_pad = -(-n // lane) * lane
        re_f = jnp.pad(re_f, (0, n_pad - n))
        im_f = jnp.pad(im_f, (0, n_pad - n))
    else:
        n_pad = n

    rows = n_pad // lane
    re2 = re_f.reshape(rows, lane)
    im2 = im_f.reshape(rows, lane)

    # ~2 MiB per plane block. When bm < rows it is automatically a multiple of 8.
    bm = min(rows, _TARGET_BLOCK_ELEMS // lane)
    grid_m = pl.cdiv(rows, bm)   # partial edge block handled by Pallas masking

    kernel = functools.partial(_complex_act_kernel, use_phase=use_phase)
    blk = pl.BlockSpec((bm, lane), lambda i: (i, 0))

    flops = (22 if use_phase else 8) * n_pad
    transcendentals = (5 if use_phase else 2) * n_pad
    bytes_accessed = 4 * n_pad * 4  # 2 input + 2 output f32 planes

    dim_sem = (pltpu.CORE_PARALLEL,) if core_parallel else ("parallel",)

    out_re2, out_im2 = pl.pallas_call(
        kernel,
        out_shape=(
            jax.ShapeDtypeStruct((rows, lane), jnp.float32),
            jax.ShapeDtypeStruct((rows, lane), jnp.float32),
        ),
        grid=(grid_m,),
        in_specs=[blk, blk],
        out_specs=(blk, blk),
        compiler_params=pltpu.CompilerParams(
            dimension_semantics=dim_sem,
            vmem_limit_bytes=_VMEM_LIMIT_BYTES,
        ),
        cost_estimate=pl.CostEstimate(
            flops=flops,
            transcendentals=transcendentals,
            bytes_accessed=bytes_accessed,
        ),
    )(re2, im2)

    if n_pad != n:
        out_re = out_re2.reshape(-1)[:n].reshape(shape)
        out_im = out_im2.reshape(-1)[:n].reshape(shape)
    else:
        out_re = out_re2.reshape(shape)
        out_im = out_im2.reshape(shape)
    return out_re, out_im


def complex_act(z: jax.Array, use_phase: bool = False,
                core_parallel: bool = False) -> jax.Array:
    """Pallas TPU implementation of ComplexAct.forward with act = SiLU."""
    z = jnp.asarray(z)
    re = jnp.real(z).astype(jnp.float32)
    im = jnp.imag(z).astype(jnp.float32)
    out_re, out_im = complex_act_planes(re, im, use_phase=use_phase,
                                        core_parallel=core_parallel)
    return jax.lax.complex(out_re, out_im)


def _reference(z: jax.Array, use_phase: bool) -> jax.Array:
    if use_phase:
        mag = jax.nn.silu(jnp.tanh(jnp.abs(z)))
        return (mag * jnp.exp(1j * jnp.angle(z))).astype(jnp.complex64)
    return jax.lax.complex(jax.nn.silu(jnp.real(z)), jax.nn.silu(jnp.imag(z)))


if __name__ == "__main__":
    key = jax.random.PRNGKey(0)
    k_re, k_im = jax.random.split(key)
    B, C, H, W = 2, 4, 16, 16
    re = jax.random.normal(k_re, (B, C, H, W), dtype=jnp.float32)
    im = jax.random.normal(k_im, (B, C, H, W), dtype=jnp.float32)
    z = jax.lax.complex(re, im)  # complex64, shape (2, 4, 16, 16)

    for use_phase in (False, True):
        out = complex_act(z, use_phase=use_phase)
        out = jax.block_until_ready(out)
        ref = _reference(z, use_phase=use_phase)
        np.testing.assert_allclose(np.asarray(out), np.asarray(ref),
                                   rtol=1e-5, atol=1e-5)

    print("KERNEL_OK")
</pallas_src>

<mosaic_0001>
module attributes {stable_mosaic.version = 11 : i64} {
  func.func @_complex_act_kernel(%arg0: i32, %arg1: memref<2x1024xf32, #tpu.memory_space<vmem>>, %arg2: memref<2x1024xf32, #tpu.memory_space<vmem>>, %arg3: memref<2x1024xf32, #tpu.memory_space<vmem>>, %arg4: memref<2x1024xf32, #tpu.memory_space<vmem>>) attributes {dimension_semantics = [#tpu.dimension_semantics<parallel>], iteration_bounds = array<i64: 1>, scalar_prefetch = 0 : i64, scratch_operands = 0 : i64, tpu.core_type = #tpu.core_type<tc>, window_params = [{transform_indices = @transform_0, window_bounds = array<i64: 2, 1024>}, {transform_indices = @transform_1, window_bounds = array<i64: 2, 1024>}, {transform_indices = @transform_2, window_bounds = array<i64: 2, 1024>}, {transform_indices = @transform_3, window_bounds = array<i64: 2, 1024>}]} {
    %c0 = arith.constant 0 : index
    %c0_0 = arith.constant 0 : index
    %0 = vector.load %arg1[%c0, %c0_0] : memref<2x1024xf32, #tpu.memory_space<vmem>>, vector<2x1024xf32>
    %c0_1 = arith.constant 0 : index
    %c0_2 = arith.constant 0 : index
    %1 = vector.load %arg2[%c0_1, %c0_2] : memref<2x1024xf32, #tpu.memory_space<vmem>>, vector<2x1024xf32>
    %cst = arith.constant 0.000000e+00 : f32
    %2 = vector.broadcast %cst : f32 to vector<2x1024xf32>
    %3 = arith.subf %2, %0 : vector<2x1024xf32>
    %4 = math.exp %3 : vector<2x1024xf32>
    %cst_3 = arith.constant 1.000000e+00 : f32
    %5 = vector.broadcast %cst_3 : f32 to vector<2x1024xf32>
    %6 = arith.addf %5, %4 : vector<2x1024xf32>
    %7 = tpu.reciprocal %6 : vector<2x1024xf32> -> vector<2x1024xf32>
    %8 = arith.mulf %0, %7 : vector<2x1024xf32>
    %c0_4 = arith.constant 0 : index
    %c0_5 = arith.constant 0 : index
    %9 = vector.load %arg3[%c0_4, %c0_5] : memref<2x1024xf32, #tpu.memory_space<vmem>>, vector<2x1024xf32>
    tpu.vector_store %arg3[%c0_4, %c0_5], %8 {strides = array<i32>} : memref<2x1024xf32, #tpu.memory_space<vmem>>, vector<2x1024xf32>,
    %cst_6 = arith.constant 0.000000e+00 : f32
    %10 = vector.broadcast %cst_6 : f32 to vector<2x1024xf32>
    %11 = arith.subf %10, %1 : vector<2x1024xf32>
    %12 = math.exp %11 : vector<2x1024xf32>
    %cst_7 = arith.constant 1.000000e+00 : f32
    %13 = vector.broadcast %cst_7 : f32 to vector<2x1024xf32>
    %14 = arith.addf %13, %12 : vector<2x1024xf32>
    %15 = tpu.reciprocal %14 : vector<2x1024xf32> -> vector<2x1024xf32>
    %16 = arith.mulf %1, %15 : vector<2x1024xf32>
    %c0_8 = arith.constant 0 : index
    %c0_9 = arith.constant 0 : index
    %17 = vector.load %arg4[%c0_8, %c0_9] : memref<2x1024xf32, #tpu.memory_space<vmem>>, vector<2x1024xf32>
    tpu.vector_store %arg4[%c0_8, %c0_9], %16 {strides = array<i32>} : memref<2x1024xf32, #tpu.memory_space<vmem>>, vector<2x1024xf32>,
    return
  }
  func.func @transform_0(%arg0: i32) -> (i32, i32) {
    %c0_i32 = arith.constant 0 : i32
    %c0_i32_0 = arith.constant 0 : i32
    return %arg0, %c0_i32 : i32, i32
  }
  func.func @transform_1(%arg0: i32) -> (i32, i32) {
    %c0_i32 = arith.constant 0 : i32
    %c0_i32_0 = arith.constant 0 : i32
    return %arg0, %c0_i32 : i32, i32
  }
  func.func @transform_2(%arg0: i32) -> (i32, i32) {
    %c0_i32 = arith.constant 0 : i32
    %c0_i32_0 = arith.constant 0 : i32
    return %arg0, %c0_i32 : i32, i32
  }
  func.func @transform_3(%arg0: i32) -> (i32, i32) {
    %c0_i32 = arith.constant 0 : i32
    %c0_i32_0 = arith.constant 0 : i32
    return %arg0, %c0_i32 : i32, i32
  }
}

</mosaic_0001>

<bundles_post_ra>
// kernel: tpu_custom_call.1
= control target key start
LH: loop header
LB: loop body
LE: loop exit
PB: predicated region body
PF: predicated region fallthrough
CT: control target
= control target key end

     0   :  { %9 = vsyncpa [#allocation3], 0  ;;  %s289_s0 = inlined_call_operand.hbm [shape: f32[2,1024], index: 0, kind: input, shape index: {}]   ;;  %s290_s1 = inlined_call_operand.hbm [shape: f32[2,1024], index: 1, kind: input, shape index: {}]   ;;  %s291_s2 = inlined_call_operand.hbm [shape: f32[2,1024], index: 2, kind: output, shape index: {0}]   ;;  %s292_s3 = inlined_call_operand.hbm [shape: f32[2,1024], index: 3, kind: output, shape index: {1}]  }
   0x1   :  { %10 = vsyncpa [#allocation6], 0 }
   0x2   :  { %11 = vsyncpa [#allocation4], 0 }
   0x3   :  { %12 = vsyncpa [#allocation9], 0  ;;  %s217_s12 = smov [#allocation2]   ;;  %s218_s14 = smov [#allocation5]  }
   0x4   :  { %s19_s13 = sshll.u32 %s217_s12, 4  ;;  %s29_s15 = sshll.u32 %s218_s14, 4  ;;  %s20_s13 = int_to_ptr.vmem [resolvable:$true] %s19_s13  ;;  %s30_s15 = int_to_ptr.vmem [resolvable:$true] %s29_s15 }
   0x5   :  { %s121_s18 = scalar_lea.hbm %s289_s0, 256 }
   0x6   :  { %p122_p0 = scmp.ne.s32.totalorder %s289_s0, %s121_s18  ;;  %p125_p1 = scmp.lt.u32.totalorder %s121_s18, %s289_s0 }
   0x8   :  { %p127_p2 = pnand %p125_p1, %p122_p0 }
   0xa   :  { %130 = shalt.err (!%p127_p2)
}
   0xb   :  { %s131_s23 = scalar_lea.vmem %s20_s13, 256  ;;  %p136_p4 = scmp.lt.s32.totalorder %s20_s13, %s20_s13 }
   0xc   :  { %p132_p3 = scmp.ne.s32.totalorder %s20_s13, %s131_s23  ;;  %p137_p5 = scmp.lt.s32.totalorder %s131_s23, %s131_s23 }
   0xe   :  { %p138_p6 = por %p137_p5, %p136_p4 }
  0x10   :  { %p139_p7 = pnand %p138_p6, %p132_p3 }
  0x12   :  { %142 = shalt.err (!%p139_p7)
}
  0x13   :  { %22 = dma.hbm_to_vmem [thread:$0]  %s289_s0, 256, %s20_s13, [#allocation3]  }
  0x14   :  { %s143_s28 = scalar_lea.hbm %s290_s1, 256 }
  0x15   :  { %p144_p8 = scmp.ne.s32.totalorder %s290_s1, %s143_s28  ;;  %p147_p9 = scmp.lt.u32.totalorder %s143_s28, %s290_s1 }
  0x17   :  { %p149_p10 = pnand %p147_p9, %p144_p8 }
  0x19   :  { %152 = shalt.err (!%p149_p10)
}
  0x1a   :  { %s153_s6 = scalar_lea.vmem %s30_s15, 256  ;;  %p158_p12 = scmp.lt.s32.totalorder %s30_s15, %s30_s15 }
  0x1b   :  { %p154_p11 = scmp.ne.s32.totalorder %s30_s15, %s153_s6  ;;  %p159_p13 = scmp.lt.s32.totalorder %s153_s6, %s153_s6 }
  0x1d   :  { %p160_p0 = por %p159_p13, %p158_p12 }
  0x1f   :  { %p161_p1 = pnand %p160_p0, %p154_p11 }
  0x21   :  { %164 = shalt.err (!%p161_p1)
}
  0x22   :  { %32 = dma.hbm_to_vmem [thread:$0]  %s290_s1, 256, %s30_s15, [#allocation6]  }
  0x23   :  { %209 = dma.done.wait [#allocation3], 256  }
  0x24   :  { %210 = vsyncadd [#allocation3], 4294967040 }
  0x25   :  { %211 = dma.done.wait [#allocation6], 256  }
  0x26   :  { %212 = vsyncadd [#allocation6], 4294967040  ;;  %v39_v0 = vld [vmem:[#allocation2] sm:$0xff]  ;;  %v40_v1 = vld [vmem:[#allocation2 + $0x8] sm:$0xff]  ;;  %s219_s1 = smov [#allocation7]   ;;  %s220_s9 = smov [#allocation8]  }
  0x27   :  { %v41_v2 = vld [vmem:[#allocation5] sm:$0xff]  ;;  %v43_v3 = vsub.f32 0.0, %v39_v0  ;;  %v44_v4 = vsub.f32 0.0, %v40_v1  ;;  %v42_v6 = vld [vmem:[#allocation5 + $0x8] sm:$0xff]  ;;  %s77_s8 = sshll.u32 %s219_s1, 4  ;;  %s87_s10 = sshll.u32 %s220_s9, 4  ;;  %s78_s8 = int_to_ptr.vmem [resolvable:$true] %s77_s8  ;;  %s88_s10 = int_to_ptr.vmem [resolvable:$true] %s87_s10 }
  0x28   :  { %v57_v5 = vsub.f32 0.0, %v41_v2  ;;  %v58_v7 = vsub.f32 0.0, %v42_v6  ;;  %s165_s11 = scalar_lea.vmem %s78_s8, 256  ;;  %p170_p3 = scmp.lt.s32.totalorder %s78_s8, %s78_s8 }
  0x29   :  { %v45_v8 = vmul.f32 1.442695, %v43_v3  ;;  %v47_v9 = vmul.f32 1.442695, %v44_v4  ;;  %p166_p2 = scmp.ne.s32.totalorder %s78_s8, %s165_s11  ;;  %p171_p4 = scmp.lt.s32.totalorder %s165_s11, %s165_s11 }
  0x2a   :  { %v59_v10 = vmul.f32 1.442695, %v57_v5  ;;  %v61_v11 = vmul.f32 1.442695, %v58_v7 }
  0x2b   :  { %105 = vpow2.f32 %v45_v8  ;;  %p172_p5 = por %p171_p4, %p170_p3 }
  0x2c   :  { %107 = vpow2.f32 %v47_v9 }
  0x2d   :  { %109 = vpow2.f32 %v59_v10  ;;  %p173_p6 = pnand %p172_p5, %p166_p2 }
  0x2e   :  { %111 = vpow2.f32 %v61_v11 }
  0x35   :  { %v106_v12 = vpop.eup %105 }
  0x36   :  { %v108_v13 = vpop.eup %107  ;;  %v49_v14 = vadd.f32 1.0, %v106_v12 }
  0x37   :  { %v110_v15 = vpop.eup %109  ;;  %v50_v16 = vadd.f32 1.0, %v108_v13 }
  0x38   :  { %v112_v17 = vpop.eup %111  ;;  %113 = vrcp.f32 %v49_v14  ;;  %v63_v18 = vadd.f32 1.0, %v110_v15 }
  0x39   :  { %115 = vrcp.f32 %v50_v16  ;;  %v64_v19 = vadd.f32 1.0, %v112_v17 }
  0x3a   :  { %117 = vrcp.f32 %v63_v18 }
  0x3b   :  { %119 = vrcp.f32 %v64_v19 }
  0x42   :  { %v114_v20 = vpop.eup %113 }
  0x43   :  { %v116_v21 = vpop.eup %115  ;;  %v53_v22 = vmul.f32 %v114_v20, %v39_v0 }
  0x44   :  { %v118_v23 = vpop.eup %117  ;;  %v54_v24 = vmul.f32 %v116_v21, %v40_v1 }
  0x45   :  { %v120_v25 = vpop.eup %119  ;;  %55 = vst [vmem:[#allocation7] sm:$0xff] %v53_v22  ;;  %v67_v26 = vmul.f32 %v118_v23, %v41_v2 }
  0x46   :  { %56 = vst [vmem:[#allocation7 + $0x8] sm:$0xff] %v54_v24  ;;  %v68_v27 = vmul.f32 %v120_v25, %v42_v6 }
  0x47   :  { %69 = vst [vmem:[#allocation8] sm:$0xff] %v67_v26 }
  0x48   :  { %176 = shalt.err (!%p173_p6)
}
  0x49   :  { %s177_s14 = scalar_lea.hbm %s291_s2, 256 }
  0x4a   :  { %p178_p7 = scmp.ne.s32.totalorder %s291_s2, %s177_s14  ;;  %p181_p8 = scmp.lt.u32.totalorder %s177_s14, %s291_s2 }
  0x4c   :  { %p183_p9 = pnand %p181_p8, %p178_p7 }
  0x4e   :  { %186 = shalt.err (!%p183_p9)
}
  0x4f   :  { %80 = dma.vmem_to_hbm [thread:$0]  %s78_s8, 256, %s291_s2, [#allocation4]   ;;  %70 = vst [vmem:[#allocation8 + $0x8] sm:$0xff] %v68_v27 }
  0x50   :  { %s187_s21 = scalar_lea.vmem %s88_s10, 256  ;;  %p192_p11 = scmp.lt.s32.totalorder %s88_s10, %s88_s10 }
  0x51   :  { %p188_p10 = scmp.ne.s32.totalorder %s88_s10, %s187_s21  ;;  %p193_p12 = scmp.lt.s32.totalorder %s187_s21, %s187_s21 }
  0x53   :  { %p194_p13 = por %p193_p12, %p192_p11 }
  0x55   :  { %p195_p0 = pnand %p194_p13, %p188_p10 }
  0x57   :  { %198 = shalt.err (!%p195_p0)
}
  0x58   :  { %s199_s24 = scalar_lea.hbm %s292_s3, 256 }
  0x59   :  { %p200_p1 = scmp.ne.s32.totalorder %s292_s3, %s199_s24  ;;  %p203_p2 = scmp.lt.u32.totalorder %s199_s24, %s292_s3 }
  0x5b   :  { %p205_p3 = pnand %p203_p2, %p200_p1 }
  0x5d   :  { %208 = shalt.err (!%p205_p3)
}
  0x5e   :  { %90 = dma.vmem_to_hbm [thread:$0]  %s88_s10, 256, %s292_s3, [#allocation9]  }
  0x5f   :  { %213 = dma.done.wait [#allocation4], 256  }
  0x60   :  { %214 = vsyncadd [#allocation4], 4294967040 }
  0x61   :  { %215 = dma.done.wait [#allocation9], 256  }
  0x62   :  { %216 = vsyncadd [#allocation9], 4294967040 }
  0x63   :  { %97 = vsyncpa [#allocation3], 1 }
  0x64   :  { %98 = vsyncpa [#allocation6], 1 }
  0x65   :  { %99 = vsyncpa [#allocation4], 1 }
  0x66   :  { %100 = vsyncpa [#allocation9], 1 }

</bundles_post_ra>
